<compile_context>
chip_gen: v7x
topology: tpu7x:2x2x1
jax: 0.10.0
libtpu: 0.0.40
codegen_flags: <defaults>
</compile_context>

<pallas_src>
import jax
import jax.numpy as jnp
from jax import lax
from jax.experimental import pallas as pl
from jax.experimental.pallas import tpu as pltpu


def _encoder_gru_kernel(tok_ref,     # (L, 1)   int32 token ids
                        emb_ref,     # (V, H)   embedding table
                        wih_ref,     # (3H, H)  W_ih, PyTorch layout, gates [r|z|n]
                        whh_ref,     # (3H, H)  W_hh, PyTorch layout, gates [r|z|n]
                        bih_ref,     # (1, 3H)  b_ih
                        bhh_ref,     # (1, 3H)  b_hh
                        out_ref,     # (L, H)   encoder outputs (written once)
                        hfinal_ref): # (1, H)   final hidden (written once)
    L, H = out_ref.shape
    V = emb_ref.shape[0]
    H3 = 3 * H

    # Contract along the last axis of both operands: A (m,H) . B (3H,H)^T -> (m,3H).
    dn = (((1,), (1,)), ((), ()))

    # ---- prologue -----------------------------------------------------------
    # In-kernel embedding gather as a one-hot matmul on the MXU (exact for f32).
    col = lax.broadcasted_iota(jnp.int32, (L, V), 1)
    onehot = (col == tok_ref[...]).astype(jnp.float32)                  # (L, V)
    emb = jnp.dot(onehot, emb_ref[...].astype(jnp.float32),
                  preferred_element_type=jnp.float32)                   # (L, H)

    # Hoisted non-recurrent input projection: one (L,H)@(3H,H)^T matmul.
    gi = lax.dot_general(emb, wih_ref[...], dn,
                         preferred_element_type=jnp.float32) + bih_ref[...]  # (L, 3H)

    # Fold the r/z recurrent biases into the precomputed projection (one-time);
    # the n-gate recurrent bias must stay inside the loop.
    bhh = bhh_ref[...]                                                   # (1, 3H)
    lane = lax.broadcasted_iota(jnp.int32, (1, H3), 1)
    gi = gi + jnp.where(lane < 2 * H, bhh, 0.0)
    bhh_n = bhh[:, 2 * H:H3]                                             # (1, H)

    whh = whh_ref[...]                                                   # (3H, H)

    # ---- serial GRU recurrence; hidden state & outputs carried in vregs -----
    h = jnp.zeros((1, H), jnp.float32)
    rows = []
    for t in range(L):                       # L static -> fully unrolled, static slices
        g = gi[t:t + 1, :]                                               # (1, 3H)
        i_r = g[:, 0:H]
        i_z = g[:, H:2 * H]
        i_n = g[:, 2 * H:H3]
        # ONE fused recurrent matmul per step (gates split from its lanes).
        gh = lax.dot_general(h, whh, dn, preferred_element_type=jnp.float32)  # (1, 3H)
        h_r = gh[:, 0:H]
        h_z = gh[:, H:2 * H]
        h_n = gh[:, 2 * H:H3] + bhh_n
        r = jax.nn.sigmoid(i_r + h_r)
        z = jax.nn.sigmoid(i_z + h_z)
        n = jnp.tanh(i_n + r * h_n)
        h = n + z * (h - n)                  # == (1-z)*n + z*h  (PyTorch GRU update)
        rows.append(h)

    out_ref[...] = jnp.concatenate(rows, axis=0).astype(out_ref.dtype)   # single store
    hfinal_ref[...] = h.astype(hfinal_ref.dtype)                         # single store


@jax.jit
def encoder_forward(tokens, emb_table, w_ih, w_hh, b_ih, b_hh):
    """Pallas GRU encoder (unidirectional, batch=1).

    tokens    : (L,)   int token ids
    emb_table : (V, H) float32 embedding table
    w_ih      : (3H, H), w_hh: (3H, H), b_ih/b_hh: (3H,)   PyTorch layout, gates [r|z|n]
    returns   : (encoder_outputs (L, H), final_hidden (1, H))
    """
    L = tokens.shape[0]
    V, H = emb_table.shape

    tok2d = tokens.astype(jnp.int32).reshape(L, 1)
    emb_table = emb_table.astype(jnp.float32)
    w_ih = w_ih.astype(jnp.float32)                      # no transposes: contraction
    w_hh = w_hh.astype(jnp.float32)                      # handled by dot_general
    bih = b_ih.astype(jnp.float32).reshape(1, 3 * H)
    bhh = b_hh.astype(jnp.float32).reshape(1, 3 * H)

    vmem = pl.BlockSpec(memory_space=pltpu.MemorySpace.VMEM)

    outs, h_final = pl.pallas_call(
        _encoder_gru_kernel,
        out_shape=(
            jax.ShapeDtypeStruct((L, H), jnp.float32),
            jax.ShapeDtypeStruct((1, H), jnp.float32),
        ),
        in_specs=[vmem] * 6,
        out_specs=(vmem, vmem),
    )(tok2d, emb_table, w_ih, w_hh, bih, bhh)
    return outs, h_final


def encoder_forward_ref(tokens, emb_table, w_ih, w_hh, b_ih, b_hh):
    """Pure-JAX reference matching torch.nn.GRU(batch_first=True) step-by-step."""
    H = emb_table.shape[1]
    emb_seq = emb_table[tokens]                       # (L, H)

    def step(h, x):
        gi = x @ w_ih.T + b_ih
        gh = h @ w_hh.T + b_hh
        i_r, i_z, i_n = gi[:H], gi[H:2 * H], gi[2 * H:]
        h_r, h_z, h_n = gh[:H], gh[H:2 * H], gh[2 * H:]
        r = jax.nn.sigmoid(i_r + h_r)
        z = jax.nn.sigmoid(i_z + h_z)
        n = jnp.tanh(i_n + r * h_n)
        h_new = (1.0 - z) * n + z * h
        return h_new, h_new

    h0 = jnp.zeros((H,), jnp.float32)
    h_last, outs = lax.scan(step, h0, emb_seq)
    return outs, h_last[None, :]


if __name__ == "__main__":
    input_vocab_size = 20
    hidden_size = 32          # H
    seq_len = 8               # L

    key = jax.random.PRNGKey(0)
    k_tok, k_emb, k_wih, k_whh, k_bih, k_bhh = jax.random.split(key, 6)

    # Deterministic synthetic parameters (PyTorch-like init scales).
    tokens = jax.random.randint(k_tok, (seq_len,), 0, input_vocab_size, jnp.int32)
    emb_table = jax.random.normal(k_emb, (input_vocab_size, hidden_size), jnp.float32)
    bound = 1.0 / jnp.sqrt(hidden_size)
    w_ih = jax.random.uniform(k_wih, (3 * hidden_size, hidden_size), jnp.float32, -bound, bound)
    w_hh = jax.random.uniform(k_whh, (3 * hidden_size, hidden_size), jnp.float32, -bound, bound)
    b_ih = jax.random.uniform(k_bih, (3 * hidden_size,), jnp.float32, -bound, bound)
    b_hh = jax.random.uniform(k_bhh, (3 * hidden_size,), jnp.float32, -bound, bound)

    outs, h_final = encoder_forward(tokens, emb_table, w_ih, w_hh, b_ih, b_hh)
    outs = jax.block_until_ready(outs)
    h_final = jax.block_until_ready(h_final)

    outs_ref, h_ref = encoder_forward_ref(tokens, emb_table, w_ih, w_hh, b_ih, b_hh)

    assert outs.shape == (seq_len, hidden_size)
    assert h_final.shape == (1, hidden_size)
    assert jnp.allclose(outs, outs_ref, atol=1e-5, rtol=1e-5)
    assert jnp.allclose(h_final, h_ref, atol=1e-5, rtol=1e-5)

    print("KERNEL_OK")
</pallas_src>

<mosaic_0001>
module attributes {stable_mosaic.version = 11 : i64} {
  func.func @_encoder_gru_kernel(%arg0: memref<8x1xi32, #tpu.memory_space<vmem>>, %arg1: memref<20x32xf32, #tpu.memory_space<vmem>>, %arg2: memref<96x32xf32, #tpu.memory_space<vmem>>, %arg3: memref<96x32xf32, #tpu.memory_space<vmem>>, %arg4: memref<1x96xf32, #tpu.memory_space<vmem>>, %arg5: memref<1x96xf32, #tpu.memory_space<vmem>>, %arg6: memref<8x32xf32, #tpu.memory_space<vmem>>, %arg7: memref<1x32xf32, #tpu.memory_space<vmem>>) attributes {dimension_semantics = [], scalar_prefetch = 0 : i64, scratch_operands = 0 : i64, tpu.core_type = #tpu.core_type<tc>} {
    %0 = tpu.iota {dimensions = array<i32: 1>} : vector<8x20xi32>
    %c0 = arith.constant 0 : index
    %c0_0 = arith.constant 0 : index
    %1 = vector.load %arg0[%c0, %c0_0] : memref<8x1xi32, #tpu.memory_space<vmem>>, vector<8x1xi32>
    %2 = vector.broadcast %1 : vector<8x1xi32> to vector<8x20xi32>
    %3 = arith.cmpi eq, %0, %2 : vector<8x20xi32>
    %4 = arith.extui %3 : vector<8x20xi1> to vector<8x20xi32>
    %5 = arith.sitofp %4 : vector<8x20xi32> to vector<8x20xf32>
    %c0_1 = arith.constant 0 : index
    %c0_2 = arith.constant 0 : index
    %6 = vector.load %arg1[%c0_1, %c0_2] : memref<20x32xf32, #tpu.memory_space<vmem>>, vector<20x32xf32>
    %cst = arith.constant dense<0.000000e+00> : vector<8x32xf32>
    %7 = tpu.matmul %5, %6, %cst {dimension_numbers = #tpu.dot_dimension_numbers<[1], [0], [0], [1], [0, 0, 1, 1], [], []>} : vector<8x20xf32>, vector<20x32xf32>, vector<8x32xf32> -> vector<8x32xf32>
    %c0_3 = arith.constant 0 : index
    %c0_4 = arith.constant 0 : index
    %8 = vector.load %arg2[%c0_3, %c0_4] : memref<96x32xf32, #tpu.memory_space<vmem>>, vector<96x32xf32>
    %cst_5 = arith.constant dense<0.000000e+00> : vector<8x96xf32>
    %9 = tpu.matmul %7, %8, %cst_5 {dimension_numbers = #tpu.dot_dimension_numbers<[1], [1], [0], [0], [0, 0, 1, 0], [], []>} : vector<8x32xf32>, vector<96x32xf32>, vector<8x96xf32> -> vector<8x96xf32>
    %c0_6 = arith.constant 0 : index
    %c0_7 = arith.constant 0 : index
    %10 = vector.load %arg4[%c0_6, %c0_7] : memref<1x96xf32, #tpu.memory_space<vmem>>, vector<1x96xf32>
    %11 = vector.broadcast %10 : vector<1x96xf32> to vector<8x96xf32>
    %12 = arith.addf %9, %11 : vector<8x96xf32>
    %c0_8 = arith.constant 0 : index
    %c0_9 = arith.constant 0 : index
    %13 = vector.load %arg5[%c0_8, %c0_9] : memref<1x96xf32, #tpu.memory_space<vmem>>, vector<1x96xf32>
    %14 = tpu.iota {dimensions = array<i32: 1>} : vector<1x96xi32>
    %c64_i32 = arith.constant 64 : i32
    %15 = vector.broadcast %c64_i32 : i32 to vector<1x96xi32>
    %16 = arith.cmpi slt, %14, %15 : vector<1x96xi32>
    %cst_10 = arith.constant 0.000000e+00 : f32
    %17 = vector.broadcast %cst_10 : f32 to vector<1x96xf32>
    %18 = arith.select %16, %13, %17 : vector<1x96xi1>, vector<1x96xf32>
    %19 = vector.broadcast %18 : vector<1x96xf32> to vector<8x96xf32>
    %20 = arith.addf %12, %19 : vector<8x96xf32>
    %21 = vector.extract_strided_slice %13 {offsets = [0, 64], sizes = [1, 32], strides = [1, 1]} : vector<1x96xf32> to vector<1x32xf32>
    %c0_11 = arith.constant 0 : index
    %c0_12 = arith.constant 0 : index
    %22 = vector.load %arg3[%c0_11, %c0_12] : memref<96x32xf32, #tpu.memory_space<vmem>>, vector<96x32xf32>
    %cst_13 = arith.constant 0.000000e+00 : f32
    %23 = vector.broadcast %cst_13 : f32 to vector<1x32xf32>
    %24 = vector.extract_strided_slice %20 {offsets = [0, 0], sizes = [1, 96], strides = [1, 1]} : vector<8x96xf32> to vector<1x96xf32>
    %25 = vector.extract_strided_slice %24 {offsets = [0, 0], sizes = [1, 32], strides = [1, 1]} : vector<1x96xf32> to vector<1x32xf32>
    %26 = vector.extract_strided_slice %24 {offsets = [0, 32], sizes = [1, 32], strides = [1, 1]} : vector<1x96xf32> to vector<1x32xf32>
    %27 = vector.extract_strided_slice %24 {offsets = [0, 64], sizes = [1, 32], strides = [1, 1]} : vector<1x96xf32> to vector<1x32xf32>
    %cst_14 = arith.constant dense<0.000000e+00> : vector<1x96xf32>
    %28 = tpu.matmul %23, %22, %cst_14 {dimension_numbers = #tpu.dot_dimension_numbers<[1], [1], [0], [0], [0, 0, 1, 0], [], []>} : vector<1x32xf32>, vector<96x32xf32>, vector<1x96xf32> -> vector<1x96xf32>
    %29 = vector.extract_strided_slice %28 {offsets = [0, 0], sizes = [1, 32], strides = [1, 1]} : vector<1x96xf32> to vector<1x32xf32>
    %30 = vector.extract_strided_slice %28 {offsets = [0, 32], sizes = [1, 32], strides = [1, 1]} : vector<1x96xf32> to vector<1x32xf32>
    %31 = vector.extract_strided_slice %28 {offsets = [0, 64], sizes = [1, 32], strides = [1, 1]} : vector<1x96xf32> to vector<1x32xf32>
    %32 = arith.addf %31, %21 : vector<1x32xf32>
    %33 = arith.addf %25, %29 : vector<1x32xf32>
    %34 = arith.negf %33 : vector<1x32xf32>
    %35 = math.exp %34 : vector<1x32xf32>
    %cst_15 = arith.constant 1.000000e+00 : f32
    %36 = vector.broadcast %cst_15 : f32 to vector<1x32xf32>
    %37 = arith.addf %36, %35 : vector<1x32xf32>
    %38 = arith.divf %36, %37 : vector<1x32xf32>
    %39 = arith.addf %26, %30 : vector<1x32xf32>
    %40 = arith.negf %39 : vector<1x32xf32>
    %41 = math.exp %40 : vector<1x32xf32>
    %cst_16 = arith.constant 1.000000e+00 : f32
    %42 = vector.broadcast %cst_16 : f32 to vector<1x32xf32>
    %43 = arith.addf %42, %41 : vector<1x32xf32>
    %44 = arith.divf %42, %43 : vector<1x32xf32>
    %45 = arith.mulf %38, %32 : vector<1x32xf32>
    %46 = arith.addf %27, %45 : vector<1x32xf32>
    %47 = math.tanh %46 : vector<1x32xf32>
    %48 = arith.subf %23, %47 : vector<1x32xf32>
    %49 = arith.mulf %44, %48 : vector<1x32xf32>
    %50 = arith.addf %47, %49 : vector<1x32xf32>
    %51 = vector.extract_strided_slice %20 {offsets = [1, 0], sizes = [1, 96], strides = [1, 1]} : vector<8x96xf32> to vector<1x96xf32>
    %52 = vector.extract_strided_slice %51 {offsets = [0, 0], sizes = [1, 32], strides = [1, 1]} : vector<1x96xf32> to vector<1x32xf32>
    %53 = vector.extract_strided_slice %51 {offsets = [0, 32], sizes = [1, 32], strides = [1, 1]} : vector<1x96xf32> to vector<1x32xf32>
    %54 = vector.extract_strided_slice %51 {offsets = [0, 64], sizes = [1, 32], strides = [1, 1]} : vector<1x96xf32> to vector<1x32xf32>
    %cst_17 = arith.constant dense<0.000000e+00> : vector<1x96xf32>
    %55 = tpu.matmul %50, %22, %cst_17 {dimension_numbers = #tpu.dot_dimension_numbers<[1], [1], [0], [0], [0, 0, 1, 0], [], []>} : vector<1x32xf32>, vector<96x32xf32>, vector<1x96xf32> -> vector<1x96xf32>
    %56 = vector.extract_strided_slice %55 {offsets = [0, 0], sizes = [1, 32], strides = [1, 1]} : vector<1x96xf32> to vector<1x32xf32>
    %57 = vector.extract_strided_slice %55 {offsets = [0, 32], sizes = [1, 32], strides = [1, 1]} : vector<1x96xf32> to vector<1x32xf32>
    %58 = vector.extract_strided_slice %55 {offsets = [0, 64], sizes = [1, 32], strides = [1, 1]} : vector<1x96xf32> to vector<1x32xf32>
    %59 = arith.addf %58, %21 : vector<1x32xf32>
    %60 = arith.addf %52, %56 : vector<1x32xf32>
    %61 = arith.negf %60 : vector<1x32xf32>
    %62 = math.exp %61 : vector<1x32xf32>
    %cst_18 = arith.constant 1.000000e+00 : f32
    %63 = vector.broadcast %cst_18 : f32 to vector<1x32xf32>
    %64 = arith.addf %63, %62 : vector<1x32xf32>
    %65 = arith.divf %63, %64 : vector<1x32xf32>
    %66 = arith.addf %53, %57 : vector<1x32xf32>
    %67 = arith.negf %66 : vector<1x32xf32>
    %68 = math.exp %67 : vector<1x32xf32>
    %cst_19 = arith.constant 1.000000e+00 : f32
    %69 = vector.broadcast %cst_19 : f32 to vector<1x32xf32>
    %70 = arith.addf %69, %68 : vector<1x32xf32>
    %71 = arith.divf %69, %70 : vector<1x32xf32>
    %72 = arith.mulf %65, %59 : vector<1x32xf32>
    %73 = arith.addf %54, %72 : vector<1x32xf32>
    %74 = math.tanh %73 : vector<1x32xf32>
    %75 = arith.subf %50, %74 : vector<1x32xf32>
    %76 = arith.mulf %71, %75 : vector<1x32xf32>
    %77 = arith.addf %74, %76 : vector<1x32xf32>
    %78 = vector.extract_strided_slice %20 {offsets = [2, 0], sizes = [1, 96], strides = [1, 1]} : vector<8x96xf32> to vector<1x96xf32>
    %79 = vector.extract_strided_slice %78 {offsets = [0, 0], sizes = [1, 32], strides = [1, 1]} : vector<1x96xf32> to vector<1x32xf32>
    %80 = vector.extract_strided_slice %78 {offsets = [0, 32], sizes = [1, 32], strides = [1, 1]} : vector<1x96xf32> to vector<1x32xf32>
    %81 = vector.extract_strided_slice %78 {offsets = [0, 64], sizes = [1, 32], strides = [1, 1]} : vector<1x96xf32> to vector<1x32xf32>
    %cst_20 = arith.constant dense<0.000000e+00> : vector<1x96xf32>
    %82 = tpu.matmul %77, %22, %cst_20 {dimension_numbers = #tpu.dot_dimension_numbers<[1], [1], [0], [0], [0, 0, 1, 0], [], []>} : vector<1x32xf32>, vector<96x32xf32>, vector<1x96xf32> -> vector<1x96xf32>
    %83 = vector.extract_strided_slice %82 {offsets = [0, 0], sizes = [1, 32], strides = [1, 1]} : vector<1x96xf32> to vector<1x32xf32>
    %84 = vector.extract_strided_slice %82 {offsets = [0, 32], sizes = [1, 32], strides = [1, 1]} : vector<1x96xf32> to vector<1x32xf32>
    %85 = vector.extract_strided_slice %82 {offsets = [0, 64], sizes = [1, 32], strides = [1, 1]} : vector<1x96xf32> to vector<1x32xf32>
    %86 = arith.addf %85, %21 : vector<1x32xf32>
    %87 = arith.addf %79, %83 : vector<1x32xf32>
    %88 = arith.negf %87 : vector<1x32xf32>
    %89 = math.exp %88 : vector<1x32xf32>
    %cst_21 = arith.constant 1.000000e+00 : f32
    %90 = vector.broadcast %cst_21 : f32 to vector<1x32xf32>
    %91 = arith.addf %90, %89 : vector<1x32xf32>
    %92 = arith.divf %90, %91 : vector<1x32xf32>
    %93 = arith.addf %80, %84 : vector<1x32xf32>
    %94 = arith.negf %93 : vector<1x32xf32>
    %95 = math.exp %94 : vector<1x32xf32>
    %cst_22 = arith.constant 1.000000e+00 : f32
    %96 = vector.broadcast %cst_22 : f32 to vector<1x32xf32>
    %97 = arith.addf %96, %95 : vector<1x32xf32>
    %98 = arith.divf %96, %97 : vector<1x32xf32>
    %99 = arith.mulf %92, %86 : vector<1x32xf32>
    %100 = arith.addf %81, %99 : vector<1x32xf32>
    %101 = math.tanh %100 : vector<1x32xf32>
    %102 = arith.subf %77, %101 : vector<1x32xf32>
    %103 = arith.mulf %98, %102 : vector<1x32xf32>
    %104 = arith.addf %101, %103 : vector<1x32xf32>
    %105 = vector.extract_strided_slice %20 {offsets = [3, 0], sizes = [1, 96], strides = [1, 1]} : vector<8x96xf32> to vector<1x96xf32>
    %106 = vector.extract_strided_slice %105 {offsets = [0, 0], sizes = [1, 32], strides = [1, 1]} : vector<1x96xf32> to vector<1x32xf32>
    %107 = vector.extract_strided_slice %105 {offsets = [0, 32], sizes = [1, 32], strides = [1, 1]} : vector<1x96xf32> to vector<1x32xf32>
    %108 = vector.extract_strided_slice %105 {offsets = [0, 64], sizes = [1, 32], strides = [1, 1]} : vector<1x96xf32> to vector<1x32xf32>
    %cst_23 = arith.constant dense<0.000000e+00> : vector<1x96xf32>
    %109 = tpu.matmul %104, %22, %cst_23 {dimension_numbers = #tpu.dot_dimension_numbers<[1], [1], [0], [0], [0, 0, 1, 0], [], []>} : vector<1x32xf32>, vector<96x32xf32>, vector<1x96xf32> -> vector<1x96xf32>
    %110 = vector.extract_strided_slice %109 {offsets = [0, 0], sizes = [1, 32], strides = [1, 1]} : vector<1x96xf32> to vector<1x32xf32>
    %111 = vector.extract_strided_slice %109 {offsets = [0, 32], sizes = [1, 32], strides = [1, 1]} : vector<1x96xf32> to vector<1x32xf32>
    %112 = vector.extract_strided_slice %109 {offsets = [0, 64], sizes = [1, 32], strides = [1, 1]} : vector<1x96xf32> to vector<1x32xf32>
    %113 = arith.addf %112, %21 : vector<1x32xf32>
    %114 = arith.addf %106, %110 : vector<1x32xf32>
    %115 = arith.negf %114 : vector<1x32xf32>
    %116 = math.exp %115 : vector<1x32xf32>
    %cst_24 = arith.constant 1.000000e+00 : f32
    %117 = vector.broadcast %cst_24 : f32 to vector<1x32xf32>
    %118 = arith.addf %117, %116 : vector<1x32xf32>
    %119 = arith.divf %117, %118 : vector<1x32xf32>
    %120 = arith.addf %107, %111 : vector<1x32xf32>
    %121 = arith.negf %120 : vector<1x32xf32>
    %122 = math.exp %121 : vector<1x32xf32>
    %cst_25 = arith.constant 1.000000e+00 : f32
    %123 = vector.broadcast %cst_25 : f32 to vector<1x32xf32>
    %124 = arith.addf %123, %122 : vector<1x32xf32>
    %125 = arith.divf %123, %124 : vector<1x32xf32>
    %126 = arith.mulf %119, %113 : vector<1x32xf32>
    %127 = arith.addf %108, %126 : vector<1x32xf32>
    %128 = math.tanh %127 : vector<1x32xf32>
    %129 = arith.subf %104, %128 : vector<1x32xf32>
    %130 = arith.mulf %125, %129 : vector<1x32xf32>
    %131 = arith.addf %128, %130 : vector<1x32xf32>
    %132 = vector.extract_strided_slice %20 {offsets = [4, 0], sizes = [1, 96], strides = [1, 1]} : vector<8x96xf32> to vector<1x96xf32>
    %133 = vector.extract_strided_slice %132 {offsets = [0, 0], sizes = [1, 32], strides = [1, 1]} : vector<1x96xf32> to vector<1x32xf32>
    %134 = vector.extract_strided_slice %132 {offsets = [0, 32], sizes = [1, 32], strides = [1, 1]} : vector<1x96xf32> to vector<1x32xf32>
    %135 = vector.extract_strided_slice %132 {offsets = [0, 64], sizes = [1, 32], strides = [1, 1]} : vector<1x96xf32> to vector<1x32xf32>
    %cst_26 = arith.constant dense<0.000000e+00> : vector<1x96xf32>
    %136 = tpu.matmul %131, %22, %cst_26 {dimension_numbers = #tpu.dot_dimension_numbers<[1], [1], [0], [0], [0, 0, 1, 0], [], []>} : vector<1x32xf32>, vector<96x32xf32>, vector<1x96xf32> -> vector<1x96xf32>
    %137 = vector.extract_strided_slice %136 {offsets = [0, 0], sizes = [1, 32], strides = [1, 1]} : vector<1x96xf32> to vector<1x32xf32>
    %138 = vector.extract_strided_slice %136 {offsets = [0, 32], sizes = [1, 32], strides = [1, 1]} : vector<1x96xf32> to vector<1x32xf32>
    %139 = vector.extract_strided_slice %136 {offsets = [0, 64], sizes = [1, 32], strides = [1, 1]} : vector<1x96xf32> to vector<1x32xf32>
    %140 = arith.addf %139, %21 : vector<1x32xf32>
    %141 = arith.addf %133, %137 : vector<1x32xf32>
    %142 = arith.negf %141 : vector<1x32xf32>
    %143 = math.exp %142 : vector<1x32xf32>
    %cst_27 = arith.constant 1.000000e+00 : f32
    %144 = vector.broadcast %cst_27 : f32 to vector<1x32xf32>
    %145 = arith.addf %144, %143 : vector<1x32xf32>
    %146 = arith.divf %144, %145 : vector<1x32xf32>
    %147 = arith.addf %134, %138 : vector<1x32xf32>
    %148 = arith.negf %147 : vector<1x32xf32>
    %149 = math.exp %148 : vector<1x32xf32>
    %cst_28 = arith.constant 1.000000e+00 : f32
    %150 = vector.broadcast %cst_28 : f32 to vector<1x32xf32>
    %151 = arith.addf %150, %149 : vector<1x32xf32>
    %152 = arith.divf %150, %151 : vector<1x32xf32>
    %153 = arith.mulf %146, %140 : vector<1x32xf32>
    %154 = arith.addf %135, %153 : vector<1x32xf32>
    %155 = math.tanh %154 : vector<1x32xf32>
    %156 = arith.subf %131, %155 : vector<1x32xf32>
    %157 = arith.mulf %152, %156 : vector<1x32xf32>
    %158 = arith.addf %155, %157 : vector<1x32xf32>
    %159 = vector.extract_strided_slice %20 {offsets = [5, 0], sizes = [1, 96], strides = [1, 1]} : vector<8x96xf32> to vector<1x96xf32>
    %160 = vector.extract_strided_slice %159 {offsets = [0, 0], sizes = [1, 32], strides = [1, 1]} : vector<1x96xf32> to vector<1x32xf32>
    %161 = vector.extract_strided_slice %159 {offsets = [0, 32], sizes = [1, 32], strides = [1, 1]} : vector<1x96xf32> to vector<1x32xf32>
    %162 = vector.extract_strided_slice %159 {offsets = [0, 64], sizes = [1, 32], strides = [1, 1]} : vector<1x96xf32> to vector<1x32xf32>
    %cst_29 = arith.constant dense<0.000000e+00> : vector<1x96xf32>
    %163 = tpu.matmul %158, %22, %cst_29 {dimension_numbers = #tpu.dot_dimension_numbers<[1], [1], [0], [0], [0, 0, 1, 0], [], []>} : vector<1x32xf32>, vector<96x32xf32>, vector<1x96xf32> -> vector<1x96xf32>
    %164 = vector.extract_strided_slice %163 {offsets = [0, 0], sizes = [1, 32], strides = [1, 1]} : vector<1x96xf32> to vector<1x32xf32>
    %165 = vector.extract_strided_slice %163 {offsets = [0, 32], sizes = [1, 32], strides = [1, 1]} : vector<1x96xf32> to vector<1x32xf32>
    %166 = vector.extract_strided_slice %163 {offsets = [0, 64], sizes = [1, 32], strides = [1, 1]} : vector<1x96xf32> to vector<1x32xf32>
    %167 = arith.addf %166, %21 : vector<1x32xf32>
    %168 = arith.addf %160, %164 : vector<1x32xf32>
    %169 = arith.negf %168 : vector<1x32xf32>
    %170 = math.exp %169 : vector<1x32xf32>
    %cst_30 = arith.constant 1.000000e+00 : f32
    %171 = vector.broadcast %cst_30 : f32 to vector<1x32xf32>
    %172 = arith.addf %171, %170 : vector<1x32xf32>
    %173 = arith.divf %171, %172 : vector<1x32xf32>
    %174 = arith.addf %161, %165 : vector<1x32xf32>
    %175 = arith.negf %174 : vector<1x32xf32>
    %176 = math.exp %175 : vector<1x32xf32>
    %cst_31 = arith.constant 1.000000e+00 : f32
    %177 = vector.broadcast %cst_31 : f32 to vector<1x32xf32>
    %178 = arith.addf %177, %176 : vector<1x32xf32>
    %179 = arith.divf %177, %178 : vector<1x32xf32>
    %180 = arith.mulf %173, %167 : vector<1x32xf32>
    %181 = arith.addf %162, %180 : vector<1x32xf32>
    %182 = math.tanh %181 : vector<1x32xf32>
    %183 = arith.subf %158, %182 : vector<1x32xf32>
    %184 = arith.mulf %179, %183 : vector<1x32xf32>
    %185 = arith.addf %182, %184 : vector<1x32xf32>
    %186 = vector.extract_strided_slice %20 {offsets = [6, 0], sizes = [1, 96], strides = [1, 1]} : vector<8x96xf32> to vector<1x96xf32>
    %187 = vector.extract_strided_slice %186 {offsets = [0, 0], sizes = [1, 32], strides = [1, 1]} : vector<1x96xf32> to vector<1x32xf32>
    %188 = vector.extract_strided_slice %186 {offsets = [0, 32], sizes = [1, 32], strides = [1, 1]} : vector<1x96xf32> to vector<1x32xf32>
    %189 = vector.extract_strided_slice %186 {offsets = [0, 64], sizes = [1, 32], strides = [1, 1]} : vector<1x96xf32> to vector<1x32xf32>
    %cst_32 = arith.constant dense<0.000000e+00> : vector<1x96xf32>
    %190 = tpu.matmul %185, %22, %cst_32 {dimension_numbers = #tpu.dot_dimension_numbers<[1], [1], [0], [0], [0, 0, 1, 0], [], []>} : vector<1x32xf32>, vector<96x32xf32>, vector<1x96xf32> -> vector<1x96xf32>
    %191 = vector.extract_strided_slice %190 {offsets = [0, 0], sizes = [1, 32], strides = [1, 1]} : vector<1x96xf32> to vector<1x32xf32>
    %192 = vector.extract_strided_slice %190 {offsets = [0, 32], sizes = [1, 32], strides = [1, 1]} : vector<1x96xf32> to vector<1x32xf32>
    %193 = vector.extract_strided_slice %190 {offsets = [0, 64], sizes = [1, 32], strides = [1, 1]} : vector<1x96xf32> to vector<1x32xf32>
    %194 = arith.addf %193, %21 : vector<1x32xf32>
    %195 = arith.addf %187, %191 : vector<1x32xf32>
    %196 = arith.negf %195 : vector<1x32xf32>
    %197 = math.exp %196 : vector<1x32xf32>
    %cst_33 = arith.constant 1.000000e+00 : f32
    %198 = vector.broadcast %cst_33 : f32 to vector<1x32xf32>
    %199 = arith.addf %198, %197 : vector<1x32xf32>
    %200 = arith.divf %198, %199 : vector<1x32xf32>
    %201 = arith.addf %188, %192 : vector<1x32xf32>
    %202 = arith.negf %201 : vector<1x32xf32>
    %203 = math.exp %202 : vector<1x32xf32>
    %cst_34 = arith.constant 1.000000e+00 : f32
    %204 = vector.broadcast %cst_34 : f32 to vector<1x32xf32>
    %205 = arith.addf %204, %203 : vector<1x32xf32>
    %206 = arith.divf %204, %205 : vector<1x32xf32>
    %207 = arith.mulf %200, %194 : vector<1x32xf32>
    %208 = arith.addf %189, %207 : vector<1x32xf32>
    %209 = math.tanh %208 : vector<1x32xf32>
    %210 = arith.subf %185, %209 : vector<1x32xf32>
    %211 = arith.mulf %206, %210 : vector<1x32xf32>
    %212 = arith.addf %209, %211 : vector<1x32xf32>
    %213 = vector.extract_strided_slice %20 {offsets = [7, 0], sizes = [1, 96], strides = [1, 1]} : vector<8x96xf32> to vector<1x96xf32>
    %214 = vector.extract_strided_slice %213 {offsets = [0, 0], sizes = [1, 32], strides = [1, 1]} : vector<1x96xf32> to vector<1x32xf32>
    %215 = vector.extract_strided_slice %213 {offsets = [0, 32], sizes = [1, 32], strides = [1, 1]} : vector<1x96xf32> to vector<1x32xf32>
    %216 = vector.extract_strided_slice %213 {offsets = [0, 64], sizes = [1, 32], strides = [1, 1]} : vector<1x96xf32> to vector<1x32xf32>
    %cst_35 = arith.constant dense<0.000000e+00> : vector<1x96xf32>
    %217 = tpu.matmul %212, %22, %cst_35 {dimension_numbers = #tpu.dot_dimension_numbers<[1], [1], [0], [0], [0, 0, 1, 0], [], []>} : vector<1x32xf32>, vector<96x32xf32>, vector<1x96xf32> -> vector<1x96xf32>
    %218 = vector.extract_strided_slice %217 {offsets = [0, 0], sizes = [1, 32], strides = [1, 1]} : vector<1x96xf32> to vector<1x32xf32>
    %219 = vector.extract_strided_slice %217 {offsets = [0, 32], sizes = [1, 32], strides = [1, 1]} : vector<1x96xf32> to vector<1x32xf32>
    %220 = vector.extract_strided_slice %217 {offsets = [0, 64], sizes = [1, 32], strides = [1, 1]} : vector<1x96xf32> to vector<1x32xf32>
    %221 = arith.addf %220, %21 : vector<1x32xf32>
    %222 = arith.addf %214, %218 : vector<1x32xf32>
    %223 = arith.negf %222 : vector<1x32xf32>
    %224 = math.exp %223 : vector<1x32xf32>
    %cst_36 = arith.constant 1.000000e+00 : f32
    %225 = vector.broadcast %cst_36 : f32 to vector<1x32xf32>
    %226 = arith.addf %225, %224 : vector<1x32xf32>
    %227 = arith.divf %225, %226 : vector<1x32xf32>
    %228 = arith.addf %215, %219 : vector<1x32xf32>
    %229 = arith.negf %228 : vector<1x32xf32>
    %230 = math.exp %229 : vector<1x32xf32>
    %cst_37 = arith.constant 1.000000e+00 : f32
    %231 = vector.broadcast %cst_37 : f32 to vector<1x32xf32>
    %232 = arith.addf %231, %230 : vector<1x32xf32>
    %233 = arith.divf %231, %232 : vector<1x32xf32>
    %234 = arith.mulf %227, %221 : vector<1x32xf32>
    %235 = arith.addf %216, %234 : vector<1x32xf32>
    %236 = math.tanh %235 : vector<1x32xf32>
    %237 = arith.subf %212, %236 : vector<1x32xf32>
    %238 = arith.mulf %233, %237 : vector<1x32xf32>
    %239 = arith.addf %236, %238 : vector<1x32xf32>
    %240 = tpu.concatenate %50, %77, %104, %131, %158, %185, %212, %239 in 0 : vector<1x32xf32>, vector<1x32xf32>, vector<1x32xf32>, vector<1x32xf32>, vector<1x32xf32>, vector<1x32xf32>, vector<1x32xf32>, vector<1x32xf32> -> vector<8x32xf32>
    %c0_38 = arith.constant 0 : index
    %c0_39 = arith.constant 0 : index
    %241 = vector.load %arg6[%c0_38, %c0_39] : memref<8x32xf32, #tpu.memory_space<vmem>>, vector<8x32xf32>
    tpu.vector_store %arg6[%c0_38, %c0_39], %240 {strides = array<i32>} : memref<8x32xf32, #tpu.memory_space<vmem>>, vector<8x32xf32>,
    %c0_40 = arith.constant 0 : index
    %c0_41 = arith.constant 0 : index
    %242 = vector.load %arg7[%c0_40, %c0_41] : memref<1x32xf32, #tpu.memory_space<vmem>>, vector<1x32xf32>
    tpu.vector_store %arg7[%c0_40, %c0_41], %239 {strides = array<i32>} : memref<1x32xf32, #tpu.memory_space<vmem>>, vector<1x32xf32>,
    return
  }
}

</mosaic_0001>

<bundles_post_ra>
// kernel: encoder_forward.1
= control target key start
LH: loop header
LB: loop body
LE: loop exit
PB: predicated region body
PF: predicated region fallthrough
CT: control target
= control target key end

     0   :  { %13 = vsyncpa [#allocation3], 0  ;;  %v2080_v3 = vmov 0   ;;  %v2081_v4 = vmov 0.0|0.0   ;;  %s2619_s0 = inlined_call_operand.vmem [shape: s32[8,1], index: 0, kind: input, shape index: {}]   ;;  %s2620_s1 = inlined_call_operand.vmem [shape: f32[20,32], index: 1, kind: input, shape index: {}]   ;;  %s2621_s2 = inlined_call_operand.vmem [shape: f32[96,32], index: 2, kind: input, shape index: {}]   ;;  %s2622_s3 = inlined_call_operand.vmem [shape: f32[96,32], index: 3, kind: input, shape index: {}]   ;;  %s2623_s4 = inlined_call_operand.vmem [shape: f32[1,96], index: 4, kind: input, shape index: {}]   ;;  %s2624_s5 = inlined_call_operand.vmem [shape: f32[1,96], index: 5, kind: input, shape index: {}]   ;;  %s2625_s6 = inlined_call_operand.hbm [shape: f32[8,32], index: 6, kind: output, shape index: {0}]   ;;  %s2626_s7 = inlined_call_operand.hbm [shape: f32[1,32], index: 7, kind: output, shape index: {1}]  }
   0x1   :  { %v29_v0 = vld [vmem:[%s2619_s0] sm:$0xff]  ;;  %v37_v2 = vld [vmem:[%s2620_s1 + $0x8] sm:$0xff]  ;;  %1983 = vset.pattern.permute.xlu0 %v2080_v3  ;;  %1755 = vmatprep.subr.bf16.mxu0 %v2081_v4 }
   0x2   :  { %v36_v1 = vld [vmem:[%s2620_s1] sm:$0xff] }
   0x3   :  { %v1756_v5 = vpack.c.bf16 %v37_v2, %v36_v1 }
   0x4   :  { %14 = vsyncpa [#allocation5], 0  ;;  %31 = vperm.xlu0 %1983, %v29_v0   ;;  %1758 = vmatprep.subr.bf16.mxu1 %v2081_v4  ;;  %vm2082_vm0 = vmmov 0   ;;  %v2083_v6 = vmov 0.0   ;;  %v38_v7 = vld [vmem:[%s2620_s1 + $0x10] sm:$0xf]  ;;  %v27_v27 = vlaneseq }
   0x5   :  { %1757 = vmatpush3.bf16.msra.mxu0 %v1756_v5  ;;  %1509 = vmatprep.mubr.msk.f32.mxu0 %vm2082_vm0, %v2083_v6  ;;  %vm43_vm1 = vcmask 1043456   ;;  %vm136_vm2 = vcmask 261120   ;;  %v117_v8 = vld [vmem:[%s2621_s2] sm:$0xff]  ;;  %v118_v9 = vld [vmem:[%s2621_s2 + $0x8] sm:$0xff]  ;;  %v119_v12 = vld [vmem:[%s2621_s2 + $0x10] sm:$0xff]  ;;  %vm39_vm4 = vcmask 162816  }
   0x6   :  { %1507 = vmatprep.subr.mxu0 %v2083_v6  ;;  %1536 = vmatprep.mubr.msk.f32.mxu1 %vm2082_vm0, %v2083_v6  ;;  %v1759_v10 = vpack.c.bf16 %v118_v9, %v117_v8  ;;  %vm2158_vm3 = vmpackc.low %vm136_vm2, %vm136_vm2  ;;  %v120_v13 = vld [vmem:[%s2621_s2 + $0x18] sm:$0xff]  ;;  %v121_v15 = vld [vmem:[%s2621_s2 + $0x20] sm:$0xff]  ;;  %v2211_v28 = vand.u32 127, %v27_v27  ;;  %s2084_s0 = smov 64   ;;  %v250_v55 = vshrl.u32 %v27_v27, 7  ;;  %vm1202_vm7 = vcmask 1040384  }
   0x7   :  { %v1763_v14 = vpack.c.bf16 %v120_v13, %v119_v12  ;;  %v122_v16 = vld [vmem:[%s2621_s2 + $0x28] sm:$0xff]  ;;  %v123_v18 = vld [vmem:[%s2621_s2 + $0x30] sm:$0xff]  ;;  %v124_v19 = vld [vmem:[%s2621_s2 + $0x38] sm:$0xff]  ;;  %vm1204_vm8 = vcmask 1041408   ;;  %vm1206_vm9 = vcmask 1042432   ;;  %vm1209_vm10 = vcmask 1044480  }
   0x8   :  { %1761 = vmatpush3.bf16.xpose.msk.msra.mxu1 %vm2158_vm3, %v1759_v10  ;;  %v1767_v17 = vpack.c.bf16 %v122_v16, %v121_v15  ;;  %v1771_v20 = vpack.c.bf16 %v124_v19, %v123_v18  ;;  %v125_v21 = vld [vmem:[%s2621_s2 + $0x40] sm:$0xff]  ;;  %v126_v22 = vld [vmem:[%s2621_s2 + $0x48] sm:$0xff]  ;;  %v127_v24 = vld [vmem:[%s2621_s2 + $0x50] sm:$0xff]  ;;  %vm247_vm6 = vcmp.lt.s32.totalorder %v2211_v28, 64  ;;  %v251_v56 = vsub.s32 0, %v250_v55  ;;  %s2087_s9 = smov [#allocation4]  }
   0x9   :  { %1508 = vmatpush3.msk.msra.mxu0 %vm43_vm1, %v38_v7  ;;  %1762 = vmatprep.subr.bf16.mxu1 %v2081_v4  ;;  %v1775_v23 = vpack.c.bf16 %v126_v22, %v125_v21  ;;  %v128_v25 = vld [vmem:[%s2621_s2 + $0x58] sm:$0xff]  ;;  %v254_v29 = vld [vmem:[%s2622_s3] sm:$0xff]  ;;  %v255_v30 = vld [vmem:[%s2622_s3 + $0x8] sm:$0xff]  ;;  %vm1211_vm11 = vcmask 1045504   ;;  %vm1213_vm12 = vcmask 1046528   ;;  %s1242_s10 = sshll.u32 %s2087_s9, 4  ;;  %s1243_s10 = int_to_ptr.vmem [resolvable:$true] %s1242_s10 }
   0xa   :  { %1782 = vmatprep.subr.bf16.mxu0 %v2081_v4  ;;  %v1779_v26 = vpack.c.bf16 %v128_v25, %v127_v24  ;;  %v2219_v32 = vpack.c.bf16 %v255_v30, %v254_v29  ;;  %v256_v34 = vld [vmem:[%s2622_s3 + $0x10] sm:$0xff]  ;;  %v257_v35 = vld [vmem:[%s2622_s3 + $0x18] sm:$0xff]  ;;  %v258_v37 = vld [vmem:[%s2622_s3 + $0x20] sm:$0xff]  ;;  %s2088_s2 = smov [#allocation2]   ;;  %vm1224_vm13 = vcmask 261127   ;;  %s2032_s1 = scalar_lea.vmem %s1243_s10, 16 }
   0xb   :  { %v2235_v36 = vpack.c.bf16 %v257_v35, %v256_v34  ;;  %v259_v38 = vld [vmem:[%s2622_s3 + $0x28] sm:$0xff]  ;;  %v260_v40 = vld [vmem:[%s2622_s3 + $0x30] sm:$0xff]  ;;  %v261_v41 = vld [vmem:[%s2622_s3 + $0x38] sm:$0xff]  ;;  %s1232_s11 = sshll.u32 %s2088_s2, 4  ;;  %p2033_p0 = scmp.ne.s32.totalorder %s1243_s10, %s2032_s1  ;;  %s2587_s11 = int_to_ptr.vmem [resolvable:$true] %s1232_s11 }
   0xc   :  { %v2247_v39 = vpack.c.bf16 %v259_v38, %v258_v37  ;;  %v2259_v42 = vpack.c.bf16 %v261_v41, %v260_v40  ;;  %v262_v43 = vld [vmem:[%s2622_s3 + $0x40] sm:$0xff]  ;;  %v263_v44 = vld [vmem:[%s2622_s3 + $0x48] sm:$0xff]  ;;  %v264_v46 = vld [vmem:[%s2622_s3 + $0x50] sm:$0xff]  ;;  %s2036_s12 = scalar_lea.vmem %s1243_s10, 32  ;;  %p2037_p1 = scmp.lt.s32.totalorder %s1243_s10, %s1243_s10 }
   0xd   :  { %v2271_v45 = vpack.c.bf16 %v263_v44, %v262_v43  ;;  %v265_v47 = vld [vmem:[%s2622_s3 + $0x58] sm:$0xff]  ;;  %v2346_v51 = vld [vmem:[%s2624_s5] sm:$0x1]  ;;  %s2086_s5 = smov 32   ;;  %p2038_p2 = scmp.lt.s32.totalorder %s2036_s12, %s2032_s1 }
   0xe   :  { %v2283_v48 = vpack.c.bf16 %v265_v47, %v264_v46  ;;  %v248_v57 = vsel %vm247_vm6, %v2346_v51, 0.0  ;;  %v1257_v58 = vld [vmem:[%s2623_s4] ss:$0 sm:$0xff]  ;;  %s2085_s4 = smov 96  }
   0xf   :  { %v252_v59 = vrot.slane %v248_v57, %v251_v56  ;;  %p2039_p3 = por %p2038_p2, %p2037_p1 }
  0x10   :  { %1765 = vmatpush3.bf16.xpose.msk.msra.mxu1 %vm2158_vm3, %v1763_v14 }
  0x11   :  { %1766 = vmatprep.subr.bf16.mxu1 %v2081_v4  ;;  %p2040_p4 = pnand %p2039_p3, %p2033_p0 }
  0x18   :  { %1769 = vmatpush3.bf16.xpose.msk.msra.mxu1 %vm2158_vm3, %v1767_v17 }
  0x19   :  { %1770 = vmatprep.subr.bf16.mxu1 %v2081_v4 }
  0x20   :  { %1773 = vmatpush3.bf16.xpose.msk.msra.mxu1 %vm2158_vm3, %v1771_v20 }
  0x21   :  { %1774 = vmatprep.subr.bf16.mxu1 %v2081_v4 }
  0x28   :  { %1777 = vmatpush3.bf16.xpose.msk.msra.mxu1 %vm2158_vm3, %v1775_v23 }
  0x29   :  { %1778 = vmatprep.subr.bf16.mxu1 %v2081_v4 }
  0x30   :  { %1781 = vmatpush3.bf16.xpose.msk.msra.mxu1 %vm2158_vm3, %v1779_v26 }
  0x31   :  { %1806 = vmatprep.subr.bf16.mxu1 %v2081_v4 }
  0x83   :  { %v32_v31 = vpop.permute.xlu0 %31 }
  0x84   :  { %vm33_vm5 = vcmp.eq.s32.totalorder %v2211_v28, %v32_v31 }
  0x85   :  { %v1254_v33 = vsel %vm33_vm5, 1.0, %v2083_v6 }
  0x86   :  { %1510 = vmatmul.mubr.msk.f32.vlgmr.msra.gmra.mrb[0].mxu0 %vm39_vm4, %v1254_v33 }
  0x87   :  { %1785 = vmatpush3.bf16.xpose.msk.msra.mxu0 %vm2158_vm3, %v2219_v32  ;;  %1563 = vmatprep.mubr.msk.f32.mxu0 %vm2082_vm0, %v2083_v6 }
  0x88   :  { %1786 = vmatprep.subr.bf16.mxu0 %v2081_v4 }
  0x8f   :  { %1789 = vmatpush3.bf16.xpose.msk.msra.mxu0 %vm2158_vm3, %v2235_v36 }
  0x90   :  { %1790 = vmatprep.subr.bf16.mxu0 %v2081_v4 }
  0x97   :  { %1793 = vmatpush3.bf16.xpose.msk.msra.mxu0 %vm2158_vm3, %v2247_v39 }
  0x98   :  { %1794 = vmatprep.subr.bf16.mxu0 %v2081_v4 }
  0x9f   :  { %1797 = vmatpush3.bf16.xpose.msk.msra.mxu0 %vm2158_vm3, %v2259_v42 }
  0xa0   :  { %1798 = vmatprep.subr.bf16.mxu0 %v2081_v4 }
  0xa7   :  { %1801 = vmatpush3.bf16.xpose.msk.msra.mxu0 %vm2158_vm3, %v2271_v45 }
  0xa8   :  { %1802 = vmatprep.subr.bf16.mxu0 %v2081_v4 }
  0xaf   :  { %1805 = vmatpush3.bf16.xpose.msk.msra.mxu0 %vm2158_vm3, %v2283_v48 }
  0xb0   :  { %1830 = vmatprep.subr.bf16.mxu0 %v2081_v4 }
  0xb6   :  { %1564 = vmatmul.mubr.f32.vlgmr.msra.gmra.mrb[2].mxu0 %v2083_v6 }
  0xb7   :  { %1833 = vmatpush3.bf16.xpose.msk.msra.mxu0 %vm2158_vm3, %v2219_v32  ;;  %1617 = vmatprep.mubr.msk.f32.mxu0 %vm2082_vm0, %v2083_v6 }
  0xb8   :  { %1834 = vmatprep.subr.bf16.mxu0 %v2081_v4 }
  0xbf   :  { %1837 = vmatpush3.bf16.xpose.msk.msra.mxu0 %vm2158_vm3, %v2235_v36 }
  0xc0   :  { %1838 = vmatprep.subr.bf16.mxu0 %v2081_v4 }
  0xc7   :  { %1841 = vmatpush3.bf16.xpose.msk.msra.mxu0 %vm2158_vm3, %v2247_v39 }
  0xc8   :  { %1842 = vmatprep.subr.bf16.mxu0 %v2081_v4 }
  0xcf   :  { %1845 = vmatpush3.bf16.xpose.msk.msra.mxu0 %vm2158_vm3, %v2259_v42 }
  0xd0   :  { %1846 = vmatprep.subr.bf16.mxu0 %v2081_v4 }
  0xd7   :  { %1849 = vmatpush3.bf16.xpose.msk.msra.mxu0 %vm2158_vm3, %v2271_v45 }
  0xd8   :  { %1850 = vmatprep.subr.bf16.mxu0 %v2081_v4 }
  0xdf   :  { %1853 = vmatpush3.bf16.xpose.msk.msra.mxu0 %vm2158_vm3, %v2283_v48 }
  0xe0   :  { %1878 = vmatprep.subr.bf16.mxu0 %v2081_v4 }
 0x159   :  { %v113_v49 = vpop.f32.mrb[0].mxu0 }
 0x15a   :  { %v1511_v50 = vpop.f32.mrb[1].mxu0  ;;  %1537 = vmatmul.mubr.msk.f32.vlgmr.msra.gmra.mrb[0].mxu1 %vm136_vm2, %v113_v49 }
 0x15b   :  { %1809 = vmatpush3.bf16.xpose.msk.msra.mxu1 %vm2158_vm3, %v2219_v32  ;;  %1590 = vmatprep.mubr.msk.f32.mxu1 %vm2082_vm0, %v2083_v6 }
 0x15c   :  { %1810 = vmatprep.subr.bf16.mxu1 %v2081_v4 }
 0x163   :  { %1813 = vmatpush3.bf16.xpose.msk.msra.mxu1 %vm2158_vm3, %v2235_v36 }
 0x164   :  { %1814 = vmatprep.subr.bf16.mxu1 %v2081_v4 }
 0x16b   :  { %1817 = vmatpush3.bf16.xpose.msk.msra.mxu1 %vm2158_vm3, %v2247_v39 }
 0x16c   :  { %1818 = vmatprep.subr.bf16.mxu1 %v2081_v4 }
 0x173   :  { %1821 = vmatpush3.bf16.xpose.msk.msra.mxu1 %vm2158_vm3, %v2259_v42 }
 0x174   :  { %1822 = vmatprep.subr.bf16.mxu1 %v2081_v4 }
 0x17b   :  { %1825 = vmatpush3.bf16.xpose.msk.msra.mxu1 %vm2158_vm3, %v2271_v45 }
 0x17c   :  { %1826 = vmatprep.subr.bf16.mxu1 %v2081_v4 }
 0x183   :  { %1829 = vmatpush3.bf16.xpose.msk.msra.mxu1 %vm2158_vm3, %v2283_v48 }
 0x184   :  { %1854 = vmatprep.subr.bf16.mxu1 %v2081_v4 }
 0x189   :  { %v371_v52 = vpop.f32.mrb[2].mxu0 }
 0x18a   :  { %v375_v53 = vadd.f32 %v371_v52, %v2346_v51  ;;  %v1565_v54 = vpop.f32.mrb[3].mxu0 }
 0x18c   :  { %384 = vrot.lane.b32.xlu0 %v375_v53, %s2084_s0 }
 0x1fe   :  { %v385_v5 = vpop.permute.xlu0 %384 }
 0x22d   :  { %v242_v60 = vpop.f32.mrb[0].mxu1 }
 0x22e   :  { %v243_v61 = vadd.f32 %v1257_v58, %v242_v60  ;;  %v1538_v62 = vpop.f32.mrb[1].mxu1 }
 0x230   :  { %v2356_v63 = vadd.f32 %v252_v59, %v243_v61 }
 0x232   :  { %v376_v0 = vadd.f32 %v371_v52, %v2356_v63 }
 0x234   :  { %v1283_v1 = vmul.f32 -1.442695, %v376_v0 }
 0x236   :  { %1984 = vpow2.f32 %v1283_v1 }
 0x240   :  { %v1985_v2 = vpop.eup %1984 }
 0x241   :  { %v380_v3 = vadd.f32 1.0, %v1985_v2 }
 0x243   :  { %1986 = vrcp.f32 %v380_v3 }
 0x24d   :  { %v1987_v7 = vpop.eup %1986 }
 0x24e   :  { %v387_v8 = vmul.f32 %v1987_v7, %v385_v5 }
 0x250   :  { %389 = vrot.lane.b32.xlu1 %v387_v8, %s2084_s0 }
 0x2c2   :  { %v390_v9 = vpop.permute.xlu1 %389 }
 0x2c3   :  { %v392_v10 = vadd.f32 %v390_v9, %v2356_v63 }
 0x2c5   :  { %1988 = vtanh.f32 %v392_v10 }
 0x2cf   :  { %v1989_v12 = vpop.eup %1988 }
 0x2d0   :  { %v394_v13 = vsub.f32 0.0, %v1989_v12 }
 0x2d2   :  { %396 = vrot.lane.b32.xlu1 %v394_v13, %s2085_s4 }
 0x344   :  { %v397_v14 = vpop.permute.xlu1 %396 }
 0x345   :  { %v399_v15 = vmul.f32 %v1987_v7, %v397_v14 }
 0x347   :  { %401 = vrot.lane.b32.xlu0 %v399_v15, %s2086_s5 }
 0x3b9   :  { %v402_v16 = vpop.permute.xlu0 %401 }
 0x3ba   :  { %v2363_v17 = vadd.f32 %v1989_v12, %v402_v16 }
 0x3bc   :  { %406 = vrot.lane.b32.xlu1 %v2363_v17, %s2084_s0 }
 0x42e   :  { %v407_v18 = vpop.permute.xlu1 %406 }
 0x42f   :  { %1591 = vmatmul.mubr.msk.f32.vlgmr.msra.gmra.mrb[2].mxu1 %vm136_vm2, %v407_v18 }
 0x430   :  { %1857 = vmatpush3.bf16.xpose.msk.msra.mxu1 %vm2158_vm3, %v2219_v32  ;;  %1644 = vmatprep.mubr.msk.f32.mxu1 %vm2082_vm0, %v2083_v6 }
 0x431   :  { %1858 = vmatprep.subr.bf16.mxu1 %v2081_v4 }
 0x438   :  { %1861 = vmatpush3.bf16.xpose.msk.msra.mxu1 %vm2158_vm3, %v2235_v36 }
 0x439   :  { %1862 = vmatprep.subr.bf16.mxu1 %v2081_v4 }
 0x440   :  { %1865 = vmatpush3.bf16.xpose.msk.msra.mxu1 %vm2158_vm3, %v2247_v39 }
 0x441   :  { %1866 = vmatprep.subr.bf16.mxu1 %v2081_v4 }
 0x448   :  { %1869 = vmatpush3.bf16.xpose.msk.msra.mxu1 %vm2158_vm3, %v2259_v42 }
 0x449   :  { %1870 = vmatprep.subr.bf16.mxu1 %v2081_v4 }
 0x450   :  { %1873 = vmatpush3.bf16.xpose.msk.msra.mxu1 %vm2158_vm3, %v2271_v45 }
 0x451   :  { %1874 = vmatprep.subr.bf16.mxu1 %v2081_v4 }
 0x458   :  { %1877 = vmatpush3.bf16.xpose.msk.msra.mxu1 %vm2158_vm3, %v2283_v48 }
 0x459   :  { %1902 = vmatprep.subr.bf16.mxu1 %v2081_v4 }
 0x502   :  { %v476_v19 = vpop.f32.mrb[2].mxu1 }
 0x503   :  { %v480_v20 = vadd.f32 %v476_v19, %v2346_v51  ;;  %v1592_v21 = vpop.f32.mrb[3].mxu1  ;;  %v482_v23 = vrot.slane %v476_v19, 7 }
 0x505   :  { %v492_v22 = vrot.slane %v480_v20, 7  ;;  %v484_v24 = vadd.f32 %v482_v23, %v2356_v63 }
 0x507   :  { %493 = vrot.lane.b32.xlu0 %v492_v22, %s2084_s0  ;;  %v1297_v25 = vmul.f32 -1.442695, %v484_v24 }
 0x509   :  { %1990 = vpow2.f32 %v1297_v25 }
 0x513   :  { %v1991_v26 = vpop.eup %1990 }
 0x514   :  { %v488_v27 = vadd.f32 1.0, %v1991_v26 }
 0x516   :  { %1992 = vrcp.f32 %v488_v27 }
 0x520   :  { %v1993_v28 = vpop.eup %1992 }
 0x579   :  { %v494_v29 = vpop.permute.xlu0 %493 }
 0x57a   :  { %v496_v30 = vmul.f32 %v1993_v28, %v494_v29 }
 0x57c   :  { %498 = vrot.lane.b32.xlu1 %v496_v30, %s2084_s0 }
 0x5ee   :  { %v499_v31 = vpop.permute.xlu1 %498 }
 0x5ef   :  { %v501_v33 = vadd.f32 %v499_v31, %v2356_v63 }
 0x5f1   :  { %1994 = vtanh.f32 %v501_v33 }
 0x5fb   :  { %v1995_v34 = vpop.eup %1994 }
 0x5fc   :  { %v504_v35 = vrot.slane %v1995_v34, 1 }
 0x5fe   :  { %v506_v37 = vsub.f32 %v2363_v17, %v504_v35 }
 0x600   :  { %v508_v38 = vrot.slane %v506_v37, 7 }
 0x602   :  { %509 = vrot.lane.b32.xlu0 %v508_v38, %s2085_s4 }
 0x674   :  { %v510_v40 = vpop.permute.xlu0 %509 }
 0x675   :  { %v512_v41 = vmul.f32 %v1993_v28, %v510_v40 }
 0x677   :  { %514 = vrot.lane.b32.xlu1 %v512_v41, %s2086_s5 }
 0x6e9   :  { %v515_v43 = vpop.permute.xlu1 %514 }
 0x6ea   :  { %v2402_v44 = vadd.f32 %v1995_v34, %v515_v43 }
 0x6ec   :  { %v519_v46 = vrot.slane %v2402_v44, 1 }
 0x6ee   :  { %520 = vrot.lane.b32.xlu0 %v519_v46, %s2084_s0 }
 0x760   :  { %v521_v47 = vpop.permute.xlu0 %520 }
 0x761   :  { %1618 = vmatmul.mubr.msk.f32.vlgmr.msra.gmra.mrb[4].mxu0 %vm136_vm2, %v521_v47 }
 0x762   :  { %1881 = vmatpush3.bf16.xpose.msk.msra.mxu0 %vm2158_vm3, %v2219_v32  ;;  %1671 = vmatprep.mubr.msk.f32.mxu0 %vm2082_vm0, %v2083_v6 }
 0x763   :  { %1882 = vmatprep.subr.bf16.mxu0 %v2081_v4 }
 0x76a   :  { %1885 = vmatpush3.bf16.xpose.msk.msra.mxu0 %vm2158_vm3, %v2235_v36 }
 0x76b   :  { %1886 = vmatprep.subr.bf16.mxu0 %v2081_v4 }
 0x772   :  { %1889 = vmatpush3.bf16.xpose.msk.msra.mxu0 %vm2158_vm3, %v2247_v39 }
 0x773   :  { %1890 = vmatprep.subr.bf16.mxu0 %v2081_v4 }
 0x77a   :  { %1893 = vmatpush3.bf16.xpose.msk.msra.mxu0 %vm2158_vm3, %v2259_v42 }
 0x77b   :  { %1894 = vmatprep.subr.bf16.mxu0 %v2081_v4 }
 0x782   :  { %1897 = vmatpush3.bf16.xpose.msk.msra.mxu0 %vm2158_vm3, %v2271_v45 }
 0x783   :  { %1898 = vmatprep.subr.bf16.mxu0 %v2081_v4 }
 0x78a   :  { %1901 = vmatpush3.bf16.xpose.msk.msra.mxu0 %vm2158_vm3, %v2283_v48 }
 0x78b   :  { %1926 = vmatprep.subr.bf16.mxu0 %v2081_v4 }
 0x834   :  { %v590_v49 = vpop.f32.mrb[4].mxu0 }
 0x835   :  { %v594_v50 = vadd.f32 %v590_v49, %v2346_v51  ;;  %v1619_v52 = vpop.f32.mrb[5].mxu0  ;;  %v596_v54 = vrot.slane %v590_v49, 6 }
 0x837   :  { %v606_v53 = vrot.slane %v594_v50, 6  ;;  %v598_v55 = vadd.f32 %v596_v54, %v2356_v63 }
 0x839   :  { %607 = vrot.lane.b32.xlu1 %v606_v53, %s2084_s0  ;;  %v1311_v56 = vmul.f32 -1.442695, %v598_v55 }
 0x83b   :  { %1996 = vpow2.f32 %v1311_v56 }
 0x845   :  { %v1997_v57 = vpop.eup %1996 }
 0x846   :  { %v602_v58 = vadd.f32 1.0, %v1997_v57 }
 0x848   :  { %1998 = vrcp.f32 %v602_v58 }
 0x852   :  { %v1999_v59 = vpop.eup %1998 }
 0x8ab   :  { %v608_v60 = vpop.permute.xlu1 %607 }
 0x8ac   :  { %v610_v61 = vmul.f32 %v1999_v59, %v608_v60 }
 0x8ae   :  { %612 = vrot.lane.b32.xlu0 %v610_v61, %s2084_s0 }
 0x920   :  { %v613_v62 = vpop.permute.xlu0 %612 }
 0x921   :  { %v615_v0 = vadd.f32 %v613_v62, %v2356_v63 }
 0x923   :  { %2000 = vtanh.f32 %v615_v0 }
 0x92d   :  { %v2001_v1 = vpop.eup %2000 }
 0x92e   :  { %v618_v2 = vrot.slane %v2001_v1, 1 }
 0x930   :  { %v620_v3 = vsub.f32 %v2402_v44, %v618_v2 }
 0x932   :  { %v622_v5 = vrot.slane %v620_v3, 7 }
 0x934   :  { %623 = vrot.lane.b32.xlu1 %v622_v5, %s2085_s4 }
 0x9a6   :  { %v624_v7 = vpop.permute.xlu1 %623 }
 0x9a7   :  { %v626_v8 = vmul.f32 %v1999_v59, %v624_v7 }
 0x9a9   :  { %628 = vrot.lane.b32.xlu0 %v626_v8, %s2086_s5 }
 0xa1b   :  { %v629_v9 = vpop.permute.xlu0 %628 }
 0xa1c   :  { %v2441_v10 = vadd.f32 %v2001_v1, %v629_v9 }
 0xa1e   :  { %v633_v12 = vrot.slane %v2441_v10, 2 }
 0xa20   :  { %634 = vrot.lane.b32.xlu1 %v633_v12, %s2084_s0 }
 0xa92   :  { %v635_v13 = vpop.permute.xlu1 %634 }
 0xa93   :  { %1645 = vmatmul.mubr.msk.f32.vlgmr.msra.gmra.mrb[4].mxu1 %vm136_vm2, %v635_v13 }
 0xa94   :  { %1905 = vmatpush3.bf16.xpose.msk.msra.mxu1 %vm2158_vm3, %v2219_v32  ;;  %1698 = vmatprep.mubr.msk.f32.mxu1 %vm2082_vm0, %v2083_v6 }
 0xa95   :  { %1906 = vmatprep.subr.bf16.mxu1 %v2081_v4 }
 0xa9c   :  { %1909 = vmatpush3.bf16.xpose.msk.msra.mxu1 %vm2158_vm3, %v2235_v36 }
 0xa9d   :  { %1910 = vmatprep.subr.bf16.mxu1 %v2081_v4 }
 0xaa4   :  { %1913 = vmatpush3.bf16.xpose.msk.msra.mxu1 %vm2158_vm3, %v2247_v39 }
 0xaa5   :  { %1914 = vmatprep.subr.bf16.mxu1 %v2081_v4 }
 0xaac   :  { %1917 = vmatpush3.bf16.xpose.msk.msra.mxu1 %vm2158_vm3, %v2259_v42 }
 0xaad   :  { %1918 = vmatprep.subr.bf16.mxu1 %v2081_v4 }
 0xab4   :  { %1921 = vmatpush3.bf16.xpose.msk.msra.mxu1 %vm2158_vm3, %v2271_v45 }
 0xab5   :  { %1922 = vmatprep.subr.bf16.mxu1 %v2081_v4 }
 0xabc   :  { %1925 = vmatpush3.bf16.xpose.msk.msra.mxu1 %vm2158_vm3, %v2283_v48 }
 0xabd   :  { %1950 = vmatprep.subr.bf16.mxu1 %v2081_v4 }
 0xb66   :  { %v704_v14 = vpop.f32.mrb[4].mxu1 }
 0xb67   :  { %v708_v15 = vadd.f32 %v704_v14, %v2346_v51  ;;  %v1646_v16 = vpop.f32.mrb[5].mxu1  ;;  %v710_v19 = vrot.slane %v704_v14, 5 }
 0xb69   :  { %v720_v18 = vrot.slane %v708_v15, 5  ;;  %v712_v20 = vadd.f32 %v710_v19, %v2356_v63 }
 0xb6b   :  { %721 = vrot.lane.b32.xlu0 %v720_v18, %s2084_s0  ;;  %v1325_v21 = vmul.f32 -1.442695, %v712_v20 }
 0xb6d   :  { %2002 = vpow2.f32 %v1325_v21 }
 0xb77   :  { %v2003_v22 = vpop.eup %2002 }
 0xb78   :  { %v716_v23 = vadd.f32 1.0, %v2003_v22 }
 0xb7a   :  { %2004 = vrcp.f32 %v716_v23 }
 0xb84   :  { %v2005_v24 = vpop.eup %2004 }
 0xbdd   :  { %v722_v25 = vpop.permute.xlu0 %721 }
 0xbde   :  { %v724_v26 = vmul.f32 %v2005_v24, %v722_v25 }
 0xbe0   :  { %726 = vrot.lane.b32.xlu1 %v724_v26, %s2084_s0 }
 0xc52   :  { %v727_v27 = vpop.permute.xlu1 %726 }
 0xc53   :  { %v729_v28 = vadd.f32 %v727_v27, %v2356_v63 }
 0xc55   :  { %2006 = vtanh.f32 %v729_v28 }
 0xc5f   :  { %v2007_v29 = vpop.eup %2006 }
 0xc60   :  { %v732_v30 = vrot.slane %v2007_v29, 1 }
 0xc62   :  { %v734_v31 = vsub.f32 %v2441_v10, %v732_v30 }
 0xc64   :  { %v736_v33 = vrot.slane %v734_v31, 7 }
 0xc66   :  { %737 = vrot.lane.b32.xlu0 %v736_v33, %s2085_s4 }
 0xcd8   :  { %v738_v34 = vpop.permute.xlu0 %737 }
 0xcd9   :  { %v740_v35 = vmul.f32 %v2005_v24, %v738_v34 }
 0xcdb   :  { %742 = vrot.lane.b32.xlu1 %v740_v35, %s2086_s5 }
 0xd4d   :  { %v743_v37 = vpop.permute.xlu1 %742 }
 0xd4e   :  { %v2480_v38 = vadd.f32 %v2007_v29, %v743_v37 }
 0xd50   :  { %v747_v40 = vrot.slane %v2480_v38, 3 }
 0xd52   :  { %748 = vrot.lane.b32.xlu0 %v747_v40, %s2084_s0 }
 0xdc4   :  { %v749_v41 = vpop.permute.xlu0 %748 }
 0xdc5   :  { %1672 = vmatmul.mubr.msk.f32.vlgmr.msra.gmra.mrb[6].mxu0 %vm136_vm2, %v749_v41 }
 0xdc6   :  { %1929 = vmatpush3.bf16.xpose.msk.msra.mxu0 %vm2158_vm3, %v2219_v32  ;;  %1725 = vmatprep.mubr.msk.f32.mxu0 %vm2082_vm0, %v2083_v6 }
 0xdc7   :  { %1930 = vmatprep.subr.bf16.mxu0 %v2081_v4 }
 0xdce   :  { %1933 = vmatpush3.bf16.xpose.msk.msra.mxu0 %vm2158_vm3, %v2235_v36 }
 0xdcf   :  { %1934 = vmatprep.subr.bf16.mxu0 %v2081_v4 }
 0xdd6   :  { %1937 = vmatpush3.bf16.xpose.msk.msra.mxu0 %vm2158_vm3, %v2247_v39 }
 0xdd7   :  { %1938 = vmatprep.subr.bf16.mxu0 %v2081_v4 }
 0xdde   :  { %1941 = vmatpush3.bf16.xpose.msk.msra.mxu0 %vm2158_vm3, %v2259_v42 }
 0xddf   :  { %1942 = vmatprep.subr.bf16.mxu0 %v2081_v4 }
 0xde6   :  { %1945 = vmatpush3.bf16.xpose.msk.msra.mxu0 %vm2158_vm3, %v2271_v45 }
 0xde7   :  { %1946 = vmatprep.subr.bf16.mxu0 %v2081_v4 }
 0xdee   :  { %1949 = vmatpush3.bf16.xpose.msk.msra.mxu0 %vm2158_vm3, %v2283_v48 }
 0xe98   :  { %v818_v43 = vpop.f32.mrb[6].mxu0 }
 0xe99   :  { %v822_v46 = vadd.f32 %v818_v43, %v2346_v51  ;;  %v1673_v47 = vpop.f32.mrb[7].mxu0  ;;  %v824_v50 = vrot.slane %v818_v43, 4 }
 0xe9b   :  { %v834_v49 = vrot.slane %v822_v46, 4  ;;  %v826_v52 = vadd.f32 %v824_v50, %v2356_v63 }
 0xe9d   :  { %835 = vrot.lane.b32.xlu1 %v834_v49, %s2084_s0  ;;  %v1339_v53 = vmul.f32 -1.442695, %v826_v52 }
 0xe9f   :  { %2008 = vpow2.f32 %v1339_v53 }
 0xea9   :  { %v2009_v54 = vpop.eup %2008 }
 0xeaa   :  { %v830_v55 = vadd.f32 1.0, %v2009_v54 }
 0xeac   :  { %2010 = vrcp.f32 %v830_v55 }
 0xeb6   :  { %v2011_v56 = vpop.eup %2010 }
 0xf0f   :  { %v836_v57 = vpop.permute.xlu1 %835 }
 0xf10   :  { %v838_v58 = vmul.f32 %v2011_v56, %v836_v57 }
 0xf12   :  { %840 = vrot.lane.b32.xlu0 %v838_v58, %s2084_s0 }
 0xf84   :  { %v841_v59 = vpop.permute.xlu0 %840 }
 0xf85   :  { %v843_v60 = vadd.f32 %v841_v59, %v2356_v63 }
 0xf87   :  { %2012 = vtanh.f32 %v843_v60 }
 0xf91   :  { %v2013_v61 = vpop.eup %2012 }
 0xf92   :  { %v846_v62 = vrot.slane %v2013_v61, 1 }
 0xf94   :  { %v848_v0 = vsub.f32 %v2480_v38, %v846_v62 }
 0xf96   :  { %v850_v1 = vrot.slane %v848_v0, 7 }
 0xf98   :  { %851 = vrot.lane.b32.xlu1 %v850_v1, %s2085_s4 }
0x100a   :  { %v852_v2 = vpop.permute.xlu1 %851 }
0x100b   :  { %v854_v3 = vmul.f32 %v2011_v56, %v852_v2 }
0x100d   :  { %856 = vrot.lane.b32.xlu0 %v854_v3, %s2086_s5 }
0x107f   :  { %v857_v5 = vpop.permute.xlu0 %856 }
0x1080   :  { %v2518_v7 = vadd.f32 %v2013_v61, %v857_v5 }
0x1082   :  { %v861_v8 = vrot.slane %v2518_v7, 4 }
0x1084   :  { %862 = vrot.lane.b32.xlu1 %v861_v8, %s2084_s0 }
0x10f6   :  { %v863_v9 = vpop.permute.xlu1 %862 }
0x10f7   :  { %1699 = vmatmul.mubr.msk.f32.vlgmr.msra.gmra.mrb[6].mxu1 %vm136_vm2, %v863_v9 }
0x10f8   :  { %1953 = vmatpush3.bf16.xpose.msk.msra.mxu1 %vm2158_vm3, %v2219_v32  ;;  %1752 = vmatprep.mubr.msk.f32.mxu1 %vm2082_vm0, %v2083_v6 }
0x10f9   :  { %1954 = vmatprep.subr.bf16.mxu1 %v2081_v4 }
0x1100   :  { %1957 = vmatpush3.bf16.xpose.msk.msra.mxu1 %vm2158_vm3, %v2235_v36 }
0x1101   :  { %1958 = vmatprep.subr.bf16.mxu1 %v2081_v4 }
0x1108   :  { %1961 = vmatpush3.bf16.xpose.msk.msra.mxu1 %vm2158_vm3, %v2247_v39 }
0x1109   :  { %1962 = vmatprep.subr.bf16.mxu1 %v2081_v4 }
0x1110   :  { %1965 = vmatpush3.bf16.xpose.msk.msra.mxu1 %vm2158_vm3, %v2259_v42 }
0x1111   :  { %1966 = vmatprep.subr.bf16.mxu1 %v2081_v4 }
0x1118   :  { %1969 = vmatpush3.bf16.xpose.msk.msra.mxu1 %vm2158_vm3, %v2271_v45 }
0x1119   :  { %1970 = vmatprep.subr.bf16.mxu1 %v2081_v4 }
0x1120   :  { %1973 = vmatpush3.bf16.xpose.msk.msra.mxu1 %vm2158_vm3, %v2283_v48 }
0x11ca   :  { %v932_v6 = vpop.f32.mrb[6].mxu1 }
0x11cb   :  { %v936_v32 = vadd.f32 %v932_v6, %v2346_v51  ;;  %v1700_v36 = vpop.f32.mrb[7].mxu1  ;;  %v938_v42 = vrot.slane %v932_v6, 3 }
0x11cd   :  { %v948_v39 = vrot.slane %v936_v32, 3  ;;  %v940_v12 = vadd.f32 %v938_v42, %v2356_v63 }
0x11cf   :  { %949 = vrot.lane.b32.xlu0 %v948_v39, %s2084_s0  ;;  %v1353_v13 = vmul.f32 -1.442695, %v940_v12 }
0x11d1   :  { %2014 = vpow2.f32 %v1353_v13 }
0x11db   :  { %v2015_v14 = vpop.eup %2014 }
0x11dc   :  { %v944_v45 = vadd.f32 1.0, %v2015_v14 }
0x11de   :  { %2016 = vrcp.f32 %v944_v45 }
0x11e8   :  { %v2017_v4 = vpop.eup %2016 }
0x1241   :  { %v950_v15 = vpop.permute.xlu0 %949 }
0x1242   :  { %v952_v16 = vmul.f32 %v2017_v4, %v950_v15  ;;  %v1203_v15 = vsel %vm1202_vm7, %v2363_v17, %v2402_v44 }
0x1244   :  { %954 = vrot.lane.b32.xlu1 %v952_v16, %s2084_s0  ;;  %v1205_v16 = vsel %vm1204_vm8, %v1203_v15, %v2441_v10 }
0x12b6   :  { %v955_v11 = vpop.permute.xlu1 %954 }
0x12b7   :  { %v957_v48 = vadd.f32 %v955_v11, %v2356_v63 }
0x12b9   :  { %2018 = vtanh.f32 %v957_v48 }
0x12c3   :  { %v2019_v18 = vpop.eup %2018 }
0x12c4   :  { %v960_v19 = vrot.slane %v2019_v18, 1 }
0x12c6   :  { %v962_v20 = vsub.f32 %v2518_v7, %v960_v19 }
0x12c8   :  { %v964_v21 = vrot.slane %v962_v20, 7 }
0x12ca   :  { %965 = vrot.lane.b32.xlu0 %v964_v21, %s2085_s4 }
0x133c   :  { %v966_v22 = vpop.permute.xlu0 %965 }
0x133d   :  { %v968_v23 = vmul.f32 %v2017_v4, %v966_v22 }
0x133f   :  { %970 = vrot.lane.b32.xlu1 %v968_v23, %s2086_s5 }
0x13b1   :  { %v971_v24 = vpop.permute.xlu1 %970 }
0x13b2   :  { %v2556_v25 = vadd.f32 %v2019_v18, %v971_v24 }
0x13b4   :  { %v975_v26 = vrot.slane %v2556_v25, 5 }
0x13b6   :  { %976 = vrot.lane.b32.xlu0 %v975_v26, %s2084_s0 }
0x1428   :  { %v977_v27 = vpop.permute.xlu0 %976 }
0x1429   :  { %1726 = vmatmul.mubr.msk.f32.vlgmr.msra.gmra.mrb[8].mxu0 %vm136_vm2, %v977_v27 }
0x14fc   :  { %v1046_v28 = vpop.f32.mrb[8].mxu0 }
0x14fd   :  { %v1050_v29 = vadd.f32 %v1046_v28, %v2346_v51  ;;  %v1727_v30 = vpop.f32.mrb[9].mxu0  ;;  %v1052_v33 = vrot.slane %v1046_v28, 2 }
0x14ff   :  { %v1062_v31 = vrot.slane %v1050_v29, 2  ;;  %v1054_v34 = vadd.f32 %v1052_v33, %v2356_v63 }
0x1501   :  { %1063 = vrot.lane.b32.xlu1 %v1062_v31, %s2084_s0  ;;  %v1367_v35 = vmul.f32 -1.442695, %v1054_v34 }
0x1503   :  { %2020 = vpow2.f32 %v1367_v35 }
0x150d   :  { %v2021_v37 = vpop.eup %2020 }
0x150e   :  { %v1058_v40 = vadd.f32 1.0, %v2021_v37 }
0x1510   :  { %2022 = vrcp.f32 %v1058_v40 }
0x151a   :  { %v2023_v41 = vpop.eup %2022 }
0x1573   :  { %v1064_v43 = vpop.permute.xlu1 %1063 }
0x1574   :  { %v1066_v46 = vmul.f32 %v2023_v41, %v1064_v43 }
0x1576   :  { %1068 = vrot.lane.b32.xlu0 %v1066_v46, %s2084_s0 }
0x15e8   :  { %v1069_v47 = vpop.permute.xlu0 %1068 }
0x15e9   :  { %v1071_v49 = vadd.f32 %v1069_v47, %v2356_v63 }
0x15eb   :  { %2024 = vtanh.f32 %v1071_v49 }
0x15f5   :  { %v2025_v50 = vpop.eup %2024 }
0x15f6   :  { %v1074_v52 = vrot.slane %v2025_v50, 1 }
0x15f8   :  { %v1076_v53 = vsub.f32 %v2556_v25, %v1074_v52 }
0x15fa   :  { %v1078_v54 = vrot.slane %v1076_v53, 7 }
0x15fc   :  { %1079 = vrot.lane.b32.xlu1 %v1078_v54, %s2085_s4 }
0x166e   :  { %v1080_v55 = vpop.permute.xlu1 %1079 }
0x166f   :  { %v1082_v56 = vmul.f32 %v2023_v41, %v1080_v55 }
0x1671   :  { %1084 = vrot.lane.b32.xlu0 %v1082_v56, %s2086_s5 }
0x16e3   :  { %v1085_v57 = vpop.permute.xlu0 %1084 }
0x16e4   :  { %v1087_v58 = vadd.f32 %v2025_v50, %v1085_v57 }
0x16e6   :  { %v1089_v59 = vrot.slane %v1087_v58, 6 }
0x16e8   :  { %1090 = vrot.lane.b32.xlu1 %v1089_v59, %s2084_s0 }
0x175a   :  { %v1091_v60 = vpop.permute.xlu1 %1090 }
0x175b   :  { %1753 = vmatmul.mubr.msk.f32.vlgmr.msra.gmra.mrb[8].mxu1 %vm136_vm2, %v1091_v60 }
0x182e   :  { %v1160_v61 = vpop.f32.mrb[8].mxu1 }
0x182f   :  { %v1164_v62 = vadd.f32 %v1160_v61, %v2346_v51  ;;  %v1754_v0 = vpop.f32.mrb[9].mxu1  ;;  %v1166_v2 = vrot.slane %v1160_v61, 1 }
0x1831   :  { %v1176_v1 = vrot.slane %v1164_v62, 1  ;;  %v1168_v3 = vadd.f32 %v1166_v2, %v2356_v63 }
0x1833   :  { %1177 = vrot.lane.b32.xlu0 %v1176_v1, %s2084_s0  ;;  %v1381_v5 = vmul.f32 -1.442695, %v1168_v3 }
0x1835   :  { %2026 = vpow2.f32 %v1381_v5 }
0x183f   :  { %v2027_v8 = vpop.eup %2026 }
0x1840   :  { %v1172_v9 = vadd.f32 1.0, %v2027_v8 }
0x1842   :  { %2028 = vrcp.f32 %v1172_v9 }
0x184c   :  { %v2029_v6 = vpop.eup %2028 }
0x18a5   :  { %v1178_v32 = vpop.permute.xlu0 %1177 }
0x18a6   :  { %v1180_v36 = vmul.f32 %v2029_v6, %v1178_v32 }
0x18a8   :  { %1182 = vrot.lane.b32.xlu1 %v1180_v36, %s2084_s0 }
0x191a   :  { %v1183_v39 = vpop.permute.xlu1 %1182 }
0x191b   :  { %v1185_v51 = vadd.f32 %v1183_v39, %v2356_v63  ;;  %v1207_v63 = vsel %vm1206_vm9, %v1205_v16, %v2480_v38 }
0x191c   :  { %v1208_v11 = vsel %vm43_vm1, %v1207_v63, %v2518_v7 }
0x191d   :  { %2030 = vtanh.f32 %v1185_v51  ;;  %v1210_v18 = vsel %vm1209_vm10, %v1208_v11, %v2556_v25 }
0x191e   :  { %v1212_v20 = vsel %vm1211_vm11, %v1210_v18, %v1087_v58 }
0x1927   :  { %v2031_v42 = vpop.eup %2030 }
0x1928   :  { %v1188_v12 = vrot.slane %v2031_v42, 1 }
0x192a   :  { %v1190_v13 = vsub.f32 %v1087_v58, %v1188_v12 }
0x192c   :  { %v1192_v14 = vrot.slane %v1190_v13, 7 }
0x192e   :  { %1193 = vrot.lane.b32.xlu0 %v1192_v14, %s2085_s4 }
0x19a0   :  { %v1194_v45 = vpop.permute.xlu0 %1193 }
0x19a1   :  { %v1196_v4 = vmul.f32 %v2029_v6, %v1194_v45 }
0x19a3   :  { %1198 = vrot.lane.b32.xlu1 %v1196_v4, %s2086_s5 }
0x1a15   :  { %v1199_v48 = vpop.permute.xlu1 %1198 }
0x1a16   :  { %v1201_v19 = vadd.f32 %v2031_v42, %v1199_v48 }
0x1a18   :  { %1221 = vrot.lane.b32.xlu1 %v1201_v19, %s2084_s0  ;;  %v1214_v21 = vsel %vm1213_vm12, %v1212_v20, %v1201_v19 }
0x1a19   :  { %1216 = vrot.lane.b32.xlu0 %v1214_v21, %s2084_s0 }
0x1a8a   :  { %v1222_v17 = vpop.permute.xlu1 %1221 }
0x1a8b   :  { %1225 = vst.msk [vmem:[#allocation4 - $0x7] sm:$0x80] %vm1224_vm13, %v1222_v17  ;;  %v1217_v44 = vpop.permute.xlu0 %1216 }
0x1a8c   :  { %1219 = vst.msk [vmem:[#allocation2] sm:$0xff] %vm136_vm2, %v1217_v44 }
0x1a8d   :  { %2043 = shalt.err (!%p2040_p4)
}
0x1a8e   :  { %s2044_s15 = scalar_lea.hbm %s2626_s7, 16 }
0x1a8f   :  { %p2045_p5 = scmp.ne.s32.totalorder %s2626_s7, %s2044_s15  ;;  %p2048_p6 = scmp.lt.u32.totalorder %s2044_s15, %s2626_s7 }
0x1a91   :  { %p2050_p7 = pnand %p2048_p6, %p2045_p5 }
0x1a93   :  { %2053 = shalt.err (!%p2050_p7)
}
0x1a94   :  { %1245 = dma.vmem_to_hbm [thread:$0]  %s1243_s10, 16, %s2626_s7, [#allocation5]  }
0x1a95   :  { %s2054_s22 = scalar_lea.vmem %s2587_s11, 128  ;;  %p2059_p9 = scmp.lt.s32.totalorder %s2587_s11, %s2587_s11 }
0x1a96   :  { %p2055_p8 = scmp.ne.s32.totalorder %s2587_s11, %s2054_s22  ;;  %p2060_p10 = scmp.lt.s32.totalorder %s2054_s22, %s2054_s22 }
0x1a98   :  { %p2061_p11 = por %p2060_p10, %p2059_p9 }
0x1a9a   :  { %p2062_p12 = pnand %p2061_p11, %p2055_p8 }
0x1a9c   :  { %2065 = shalt.err (!%p2062_p12)
}
0x1a9d   :  { %s2066_s25 = scalar_lea.hbm %s2625_s6, 128 }
0x1a9e   :  { %p2067_p13 = scmp.ne.s32.totalorder %s2625_s6, %s2066_s25  ;;  %p2070_p0 = scmp.lt.u32.totalorder %s2066_s25, %s2625_s6 }
0x1aa0   :  { %p2072_p1 = pnand %p2070_p0, %p2067_p13 }
0x1aa2   :  { %2075 = shalt.err (!%p2072_p1)
}
0x1aa3   :  { %1235 = dma.vmem_to_hbm [thread:$0]  %s2587_s11, 128, %s2625_s6, [#allocation3]  }
0x1aa4   :  { %2076 = dma.done.wait [#allocation3], 128  }
0x1aa5   :  { %2077 = vsyncadd [#allocation3], 4294967168 }
0x1aa6   :  { %2078 = dma.done.wait [#allocation5], 16  }
0x1aa7   :  { %2079 = vsyncadd [#allocation5], 4294967280 }
0x1aa8   :  { %1252 = vsyncpa [#allocation3], 1 }
0x1aa9   :  { %1253 = vsyncpa [#allocation5], 1 }

</bundles_post_ra>
